<compile_context>
chip_gen: v6e
topology: v6e:2x2x1
jax: 0.10.0
libtpu: 0.0.40
codegen_flags: <defaults>
</compile_context>

<pallas_src>
import math

import jax
import jax.numpy as jnp
from jax import lax
from jax.experimental import pallas as pl
from jax.experimental.pallas import tpu as pltpu

EPS = 1e-5


# ------------------------------ host wrapper ----------------------------------

def mobilenet_tens_forward(x_nchw, params):
    B, Cin, H, W = x_nchw.shape
    assert Cin == 1 and H % 2 == 0 and W % 2 == 0
    Ho, Wo = H // 2, W // 2
    M1 = Ho * Wo
    Cmid, Cout = 32, 1024
    s = 1.0 / math.sqrt(1.0 + EPS)          # eval-mode BN scale (shift = 0)

    # ---- host prep (single-channel input; cheap relative to the 1024-wide output) ----
    # im2col of 4x4/stride-2 patches: the 2x2 avg-pool is folded into the 3x3 conv,
    # giving an effective 4x4 kernel applied at stride 2 on the padded input.
    x = x_nchw[:, 0]                                           # (B, H, W)
    xp = jnp.pad(x, ((0, 0), (1, 1), (1, 1)))                  # (B, H+2, W+2)
    cols = []
    for a in range(4):
        for b in range(4):
            cols.append(xp[:, a:a + 2 * Ho:2, b:b + 2 * Wo:2])  # (B, Ho, Wo)
    patches = jnp.stack(cols, axis=-1).reshape(B, M1, 16)

    # fold 2x2 avg-pool (factor 0.25) and BN1 scale into the 3x3->4x4 effective weights
    w1 = jnp.transpose(params['w_conv1'][:, 0], (1, 2, 0))      # (3,3,32)
    weff = jnp.zeros((4, 4, Cmid), jnp.float32)
    for u in range(2):
        for v in range(2):
            weff = weff.at[u:u + 3, v:v + 3, :].add(w1)
    weff = (0.25 * s * weff).reshape(16, Cmid)                  # (16, 32)

    wdw = (s * jnp.transpose(params['w_dw'][:, 0], (1, 2, 0))).reshape(9, Cmid)   # (9, 32)
    wpw = s * jnp.transpose(params['w_pw'][:, :, 0, 0], (1, 0))                   # (32, 1024)

    # padding band (rows of zeros) around the flattened h1 so the depthwise 3x3 taps are
    # plain row-offset slices; P rounded to a sublane multiple for aligned stores.
    P = ((Wo + 1 + 7) // 8) * 8

    def fused_kernel(p_ref, w1_ref, wdw_ref, wpw_ref, o_ref, h1pad_ref):
        # ---- stage 1: (3x3 conv + 2x2 avg-pool) as matmul, BN folded, ReLU ----
        h1 = jnp.dot(p_ref[...], w1_ref[...], preferred_element_type=jnp.float32)
        h1 = jnp.maximum(h1, 0.0)                               # (M1, 32)
        h1pad_ref[pl.ds(0, P), :] = jnp.zeros((P, Cmid), jnp.float32)
        h1pad_ref[pl.ds(P + M1, P), :] = jnp.zeros((P, Cmid), jnp.float32)
        h1pad_ref[pl.ds(P, M1), :] = h1

        # ---- stage 2: depthwise 3x3 conv (pad 1) on the flattened layout ----
        # row m = i*Wo + j; tap (dh,dw) reads row m + (dh-1)*Wo + (dw-1) of the padded
        # buffer. H-boundary taps land in the zero pad bands; W-boundary wrap-around is
        # masked out per column parity (left/right edge).
        col = lax.broadcasted_iota(jnp.int32, (M1, 1), 0) % Wo
        not_left = (col != 0).astype(jnp.float32)
        not_right = (col != Wo - 1).astype(jnp.float32)
        acc = jnp.zeros((M1, Cmid), jnp.float32)
        for dh in range(3):
            for dw in range(3):
                off = (dh - 1) * Wo + (dw - 1)
                v = h1pad_ref[pl.ds(P + off, M1), :]
                if dw == 0:
                    v = v * not_left
                elif dw == 2:
                    v = v * not_right
                acc = acc + v * wdw_ref[dh * 3 + dw, :][None, :]
        h2 = jnp.maximum(acc, 0.0)                              # (M1, 32)

        # ---- stage 3: pointwise 1x1 conv (32 -> 1024), BN folded, ReLU ----
        y = jnp.dot(h2, wpw_ref[...], preferred_element_type=jnp.float32)
        o_ref[...] = jnp.maximum(y, 0.0).astype(o_ref.dtype)    # lane-dense (M1, 1024)

    flops = 2 * B * M1 * (16 * Cmid + 9 * Cmid + Cmid * Cout)
    bytes_accessed = 4 * (B * M1 * 16 + 16 * Cmid + 9 * Cmid + Cmid * Cout + B * M1 * Cout)

    out = pl.pallas_call(
        fused_kernel,
        out_shape=jax.ShapeDtypeStruct((B, M1, Cout), jnp.float32),
        grid=(B,),
        in_specs=[
            pl.BlockSpec((None, M1, 16), lambda b: (b, 0, 0)),
            pl.BlockSpec((16, Cmid), lambda b: (0, 0)),
            pl.BlockSpec((9, Cmid), lambda b: (0, 0)),
            pl.BlockSpec((Cmid, Cout), lambda b: (0, 0)),
        ],
        out_specs=pl.BlockSpec((None, M1, Cout), lambda b: (b, 0, 0)),
        scratch_shapes=[pltpu.VMEM((M1 + 2 * P, Cmid), jnp.float32)],
        compiler_params=pltpu.CompilerParams(dimension_semantics=("parallel",)),
        cost_estimate=pl.CostEstimate(flops=flops, transcendentals=0,
                                      bytes_accessed=bytes_accessed),
    )(patches, weff, wdw, wpw)

    out = out.reshape(B, Ho, Wo, Cout)
    # PyTorch consumer expects NCHW; this transpose is an XLA op outside the kernel.
    return {'clipwise_output': jnp.transpose(out, (0, 3, 1, 2))}


# --------------------------- parameters & reference ---------------------------

def init_params(key):
    """Deterministic Xavier-uniform init mirroring the PyTorch module shapes."""
    k1, k2, k3 = jax.random.split(key, 3)

    def xavier(k, shape, fan_in, fan_out):
        bound = math.sqrt(6.0 / (fan_in + fan_out))
        return jax.random.uniform(k, shape, jnp.float32, -bound, bound)

    return {
        # Conv2d(1, 32, 3, 1, 1, bias=False)             -> (32, 1, 3, 3)
        'w_conv1': xavier(k1, (32, 1, 3, 3), 1 * 9, 32 * 9),
        # Conv2d(32, 32, 3, 1, 1, groups=32, bias=False) -> (32, 1, 3, 3)
        'w_dw':    xavier(k2, (32, 1, 3, 3), 1 * 9, 32 * 9),
        # Conv2d(32, 1024, 1, 1, 0, bias=False)          -> (1024, 32, 1, 1)
        'w_pw':    xavier(k3, (1024, 32, 1, 1), 32, 1024),
        # fc1 / fc_audioset / bn0 exist in __init__ but are unused by forward.
    }


def reference_forward(x_nchw, params):
    """Pure-JAX (lax.conv) reference for correctness checking."""
    x = jnp.transpose(x_nchw, (0, 2, 3, 1))                            # NHWC
    w1 = jnp.transpose(params['w_conv1'], (2, 3, 1, 0))                # (3,3,1,32)
    y = lax.conv_general_dilated(x, w1, (1, 1), ((1, 1), (1, 1)),
                                 dimension_numbers=('NHWC', 'HWIO', 'NHWC'))
    y = lax.reduce_window(y, 0.0, lax.add, (1, 2, 2, 1), (1, 2, 2, 1), 'VALID') / 4.0
    y = jnp.maximum(y / jnp.sqrt(1.0 + EPS), 0.0)

    wdw = jnp.transpose(params['w_dw'], (2, 3, 1, 0))                  # (3,3,1,32)
    y = lax.conv_general_dilated(y, wdw, (1, 1), ((1, 1), (1, 1)),
                                 dimension_numbers=('NHWC', 'HWIO', 'NHWC'),
                                 feature_group_count=32)
    y = jnp.maximum(y / jnp.sqrt(1.0 + EPS), 0.0)

    wpw = jnp.transpose(params['w_pw'], (2, 3, 1, 0))                  # (1,1,32,1024)
    y = lax.conv_general_dilated(y, wpw, (1, 1), ((0, 0), (0, 0)),
                                 dimension_numbers=('NHWC', 'HWIO', 'NHWC'))
    y = jnp.maximum(y / jnp.sqrt(1.0 + EPS), 0.0)
    return jnp.transpose(y, (0, 3, 1, 2))                              # NCHW


# ----------------------------------- main -------------------------------------

if __name__ == "__main__":
    key = jax.random.PRNGKey(0)
    kx, kp = jax.random.split(key)

    # Small NCHW input consistent with Conv2d(1, 32, ...) expecting 1 channel.
    x = jax.random.normal(kx, (2, 1, 16, 16), jnp.float32)
    params = init_params(kp)

    fwd = jax.jit(mobilenet_tens_forward)
    out = fwd(x, params)
    clip = jax.block_until_ready(out['clipwise_output'])
    assert clip.shape == (2, 1024, 8, 8), clip.shape

    ref = jax.block_until_ready(reference_forward(x, params))
    err = float(jnp.max(jnp.abs(clip - ref)))
    assert err < 1e-3, f"max abs err {err}"

    print("KERNEL_OK")
</pallas_src>

<mosaic_0001>
module attributes {stable_mosaic.version = 11 : i64} {
  func.func @fused_kernel(%arg0: i32, %arg1: memref<1x64x16xf32, #tpu.memory_space<vmem>>, %arg2: memref<16x32xf32, #tpu.memory_space<vmem>>, %arg3: memref<9x32xf32, #tpu.memory_space<vmem>>, %arg4: memref<32x1024xf32, #tpu.memory_space<vmem>>, %arg5: memref<1x64x1024xf32, #tpu.memory_space<vmem>>, %arg6: memref<96x32xf32, #tpu.memory_space<vmem>>) attributes {dimension_semantics = [#tpu.dimension_semantics<parallel>], iteration_bounds = array<i64: 2>, scalar_prefetch = 0 : i64, scratch_operands = 1 : i64, tpu.core_type = #tpu.core_type<tc>, window_params = [{transform_indices = @transform_0, window_bounds = array<i64: 1, 64, 16>}, {pipeline_mode = #tpu.pipeline_mode<synchronous>, transform_indices = @transform_1, window_bounds = array<i64: 16, 32>}, {pipeline_mode = #tpu.pipeline_mode<synchronous>, transform_indices = @transform_2, window_bounds = array<i64: 9, 32>}, {pipeline_mode = #tpu.pipeline_mode<synchronous>, transform_indices = @transform_3, window_bounds = array<i64: 32, 1024>}, {transform_indices = @transform_4, window_bounds = array<i64: 1, 64, 1024>}]} {
    %c0 = arith.constant 0 : index
    %c0_0 = arith.constant 0 : index
    %c0_1 = arith.constant 0 : index
    %0 = vector.load %arg1[%c0, %c0_0, %c0_1] : memref<1x64x16xf32, #tpu.memory_space<vmem>>, vector<1x64x16xf32>
    %1 = vector.shape_cast %0 : vector<1x64x16xf32> to vector<64x16xf32>
    %c0_2 = arith.constant 0 : index
    %c0_3 = arith.constant 0 : index
    %2 = vector.load %arg2[%c0_2, %c0_3] : memref<16x32xf32, #tpu.memory_space<vmem>>, vector<16x32xf32>
    %cst = arith.constant dense<0.000000e+00> : vector<64x32xf32>
    %3 = tpu.matmul %1, %2, %cst {dimension_numbers = #tpu.dot_dimension_numbers<[1], [0], [0], [1], [0, 0, 1, 1], [], []>} : vector<64x16xf32>, vector<16x32xf32>, vector<64x32xf32> -> vector<64x32xf32>
    %cst_4 = arith.constant 0.000000e+00 : f32
    %4 = vector.broadcast %cst_4 : f32 to vector<64x32xf32>
    %5 = arith.maximumf %3, %4 : vector<64x32xf32>
    %cst_5 = arith.constant 0.000000e+00 : f32
    %6 = vector.broadcast %cst_5 : f32 to vector<16x32xf32>
    %c0_6 = arith.constant 0 : index
    %c0_7 = arith.constant 0 : index
    %7 = vector.load %arg6[%c0_6, %c0_7] : memref<96x32xf32, #tpu.memory_space<vmem>>, vector<16x32xf32>
    tpu.vector_store %arg6[%c0_6, %c0_7], %6 {strides = array<i32>} : memref<96x32xf32, #tpu.memory_space<vmem>>, vector<16x32xf32>,
    %cst_8 = arith.constant 0.000000e+00 : f32
    %8 = vector.broadcast %cst_8 : f32 to vector<16x32xf32>
    %c80 = arith.constant 80 : index
    %c0_9 = arith.constant 0 : index
    %9 = vector.load %arg6[%c80, %c0_9] : memref<96x32xf32, #tpu.memory_space<vmem>>, vector<16x32xf32>
    tpu.vector_store %arg6[%c80, %c0_9], %8 {strides = array<i32>} : memref<96x32xf32, #tpu.memory_space<vmem>>, vector<16x32xf32>,
    %c16 = arith.constant 16 : index
    %c0_10 = arith.constant 0 : index
    %10 = vector.load %arg6[%c16, %c0_10] : memref<96x32xf32, #tpu.memory_space<vmem>>, vector<64x32xf32>
    tpu.vector_store %arg6[%c16, %c0_10], %5 {strides = array<i32>} : memref<96x32xf32, #tpu.memory_space<vmem>>, vector<64x32xf32>,
    %11 = tpu.iota {dimensions = array<i32: 0>} : vector<64x1xi32>
    %c8_i32 = arith.constant 8 : i32
    %c0_i32 = arith.constant 0 : i32
    %12 = arith.cmpi eq, %c8_i32, %c0_i32 : i32
    %c1_i32 = arith.constant 1 : i32
    %13 = arith.select %12, %c1_i32, %c8_i32 : i32
    %14 = vector.broadcast %13 : i32 to vector<64x1xi32>
    %15 = arith.remsi %11, %14 : vector<64x1xi32>
    %c0_i32_11 = arith.constant 0 : i32
    %16 = vector.broadcast %c0_i32_11 : i32 to vector<64x1xi32>
    %17 = arith.cmpi ne, %15, %16 : vector<64x1xi32>
    %c0_i32_12 = arith.constant 0 : i32
    %18 = vector.broadcast %c0_i32_12 : i32 to vector<64x1xi32>
    %19 = arith.cmpi slt, %15, %18 : vector<64x1xi32>
    %c0_i32_13 = arith.constant 0 : i32
    %20 = arith.cmpi slt, %13, %c0_i32_13 : i32
    %21 = vector.broadcast %20 : i1 to vector<64x1xi1>
    %22 = vector.broadcast %21 : vector<64x1xi1> to vector<64x1xi1>
    %23 = arith.xori %19, %22 : vector<64x1xi1>
    %24 = arith.andi %23, %17 : vector<64x1xi1>
    %25 = vector.broadcast %13 : i32 to vector<64x1xi32>
    %26 = arith.addi %15, %25 : vector<64x1xi32>
    %27 = arith.select %24, %26, %15 : vector<64x1xi1>, vector<64x1xi32>
    %c0_i32_14 = arith.constant 0 : i32
    %28 = vector.broadcast %c0_i32_14 : i32 to vector<64x1xi32>
    %29 = arith.cmpi ne, %27, %28 : vector<64x1xi32>
    %30 = arith.extui %29 : vector<64x1xi1> to vector<64x1xi32>
    %31 = arith.sitofp %30 : vector<64x1xi32> to vector<64x1xf32>
    %c7_i32 = arith.constant 7 : i32
    %32 = vector.broadcast %c7_i32 : i32 to vector<64x1xi32>
    %33 = arith.cmpi ne, %27, %32 : vector<64x1xi32>
    %34 = arith.extui %33 : vector<64x1xi1> to vector<64x1xi32>
    %35 = arith.sitofp %34 : vector<64x1xi32> to vector<64x1xf32>
    %cst_15 = arith.constant 0.000000e+00 : f32
    %36 = vector.broadcast %cst_15 : f32 to vector<64x32xf32>
    %c7 = arith.constant 7 : index
    %c0_16 = arith.constant 0 : index
    %37 = vector.load %arg6[%c7, %c0_16] : memref<96x32xf32, #tpu.memory_space<vmem>>, vector<64x32xf32>
    %38 = vector.broadcast %31 : vector<64x1xf32> to vector<64x32xf32>
    %39 = arith.mulf %37, %38 : vector<64x32xf32>
    %c0_17 = arith.constant 0 : index
    %c0_18 = arith.constant 0 : index
    %40 = vector.load %arg3[%c0_17, %c0_18] : memref<9x32xf32, #tpu.memory_space<vmem>>, vector<1x32xf32>
    %41 = vector.shape_cast %40 : vector<1x32xf32> to vector<32xf32>
    %42 = vector.shape_cast %41 : vector<32xf32> to vector<1x32xf32>
    %43 = vector.broadcast %42 : vector<1x32xf32> to vector<64x32xf32>
    %44 = arith.mulf %39, %43 : vector<64x32xf32>
    %45 = arith.addf %36, %44 : vector<64x32xf32>
    %c8 = arith.constant 8 : index
    %c0_19 = arith.constant 0 : index
    %46 = vector.load %arg6[%c8, %c0_19] : memref<96x32xf32, #tpu.memory_space<vmem>>, vector<64x32xf32>
    %c1 = arith.constant 1 : index
    %c0_20 = arith.constant 0 : index
    %47 = vector.load %arg3[%c1, %c0_20] : memref<9x32xf32, #tpu.memory_space<vmem>>, vector<1x32xf32>
    %48 = vector.shape_cast %47 : vector<1x32xf32> to vector<32xf32>
    %49 = vector.shape_cast %48 : vector<32xf32> to vector<1x32xf32>
    %50 = vector.broadcast %49 : vector<1x32xf32> to vector<64x32xf32>
    %51 = arith.mulf %46, %50 : vector<64x32xf32>
    %52 = arith.addf %45, %51 : vector<64x32xf32>
    %c9 = arith.constant 9 : index
    %c0_21 = arith.constant 0 : index
    %53 = vector.load %arg6[%c9, %c0_21] : memref<96x32xf32, #tpu.memory_space<vmem>>, vector<64x32xf32>
    %54 = vector.broadcast %35 : vector<64x1xf32> to vector<64x32xf32>
    %55 = arith.mulf %53, %54 : vector<64x32xf32>
    %c2 = arith.constant 2 : index
    %c0_22 = arith.constant 0 : index
    %56 = vector.load %arg3[%c2, %c0_22] : memref<9x32xf32, #tpu.memory_space<vmem>>, vector<1x32xf32>
    %57 = vector.shape_cast %56 : vector<1x32xf32> to vector<32xf32>
    %58 = vector.shape_cast %57 : vector<32xf32> to vector<1x32xf32>
    %59 = vector.broadcast %58 : vector<1x32xf32> to vector<64x32xf32>
    %60 = arith.mulf %55, %59 : vector<64x32xf32>
    %61 = arith.addf %52, %60 : vector<64x32xf32>
    %c15 = arith.constant 15 : index
    %c0_23 = arith.constant 0 : index
    %62 = vector.load %arg6[%c15, %c0_23] : memref<96x32xf32, #tpu.memory_space<vmem>>, vector<64x32xf32>
    %63 = vector.broadcast %31 : vector<64x1xf32> to vector<64x32xf32>
    %64 = arith.mulf %62, %63 : vector<64x32xf32>
    %c3 = arith.constant 3 : index
    %c0_24 = arith.constant 0 : index
    %65 = vector.load %arg3[%c3, %c0_24] : memref<9x32xf32, #tpu.memory_space<vmem>>, vector<1x32xf32>
    %66 = vector.shape_cast %65 : vector<1x32xf32> to vector<32xf32>
    %67 = vector.shape_cast %66 : vector<32xf32> to vector<1x32xf32>
    %68 = vector.broadcast %67 : vector<1x32xf32> to vector<64x32xf32>
    %69 = arith.mulf %64, %68 : vector<64x32xf32>
    %70 = arith.addf %61, %69 : vector<64x32xf32>
    %c16_25 = arith.constant 16 : index
    %c0_26 = arith.constant 0 : index
    %71 = vector.load %arg6[%c16_25, %c0_26] : memref<96x32xf32, #tpu.memory_space<vmem>>, vector<64x32xf32>
    %c4 = arith.constant 4 : index
    %c0_27 = arith.constant 0 : index
    %72 = vector.load %arg3[%c4, %c0_27] : memref<9x32xf32, #tpu.memory_space<vmem>>, vector<1x32xf32>
    %73 = vector.shape_cast %72 : vector<1x32xf32> to vector<32xf32>
    %74 = vector.shape_cast %73 : vector<32xf32> to vector<1x32xf32>
    %75 = vector.broadcast %74 : vector<1x32xf32> to vector<64x32xf32>
    %76 = arith.mulf %71, %75 : vector<64x32xf32>
    %77 = arith.addf %70, %76 : vector<64x32xf32>
    %c17 = arith.constant 17 : index
    %c0_28 = arith.constant 0 : index
    %78 = vector.load %arg6[%c17, %c0_28] : memref<96x32xf32, #tpu.memory_space<vmem>>, vector<64x32xf32>
    %79 = vector.broadcast %35 : vector<64x1xf32> to vector<64x32xf32>
    %80 = arith.mulf %78, %79 : vector<64x32xf32>
    %c5 = arith.constant 5 : index
    %c0_29 = arith.constant 0 : index
    %81 = vector.load %arg3[%c5, %c0_29] : memref<9x32xf32, #tpu.memory_space<vmem>>, vector<1x32xf32>
    %82 = vector.shape_cast %81 : vector<1x32xf32> to vector<32xf32>
    %83 = vector.shape_cast %82 : vector<32xf32> to vector<1x32xf32>
    %84 = vector.broadcast %83 : vector<1x32xf32> to vector<64x32xf32>
    %85 = arith.mulf %80, %84 : vector<64x32xf32>
    %86 = arith.addf %77, %85 : vector<64x32xf32>
    %c23 = arith.constant 23 : index
    %c0_30 = arith.constant 0 : index
    %87 = vector.load %arg6[%c23, %c0_30] : memref<96x32xf32, #tpu.memory_space<vmem>>, vector<64x32xf32>
    %88 = vector.broadcast %31 : vector<64x1xf32> to vector<64x32xf32>
    %89 = arith.mulf %87, %88 : vector<64x32xf32>
    %c6 = arith.constant 6 : index
    %c0_31 = arith.constant 0 : index
    %90 = vector.load %arg3[%c6, %c0_31] : memref<9x32xf32, #tpu.memory_space<vmem>>, vector<1x32xf32>
    %91 = vector.shape_cast %90 : vector<1x32xf32> to vector<32xf32>
    %92 = vector.shape_cast %91 : vector<32xf32> to vector<1x32xf32>
    %93 = vector.broadcast %92 : vector<1x32xf32> to vector<64x32xf32>
    %94 = arith.mulf %89, %93 : vector<64x32xf32>
    %95 = arith.addf %86, %94 : vector<64x32xf32>
    %c24 = arith.constant 24 : index
    %c0_32 = arith.constant 0 : index
    %96 = vector.load %arg6[%c24, %c0_32] : memref<96x32xf32, #tpu.memory_space<vmem>>, vector<64x32xf32>
    %c7_33 = arith.constant 7 : index
    %c0_34 = arith.constant 0 : index
    %97 = vector.load %arg3[%c7_33, %c0_34] : memref<9x32xf32, #tpu.memory_space<vmem>>, vector<1x32xf32>
    %98 = vector.shape_cast %97 : vector<1x32xf32> to vector<32xf32>
    %99 = vector.shape_cast %98 : vector<32xf32> to vector<1x32xf32>
    %100 = vector.broadcast %99 : vector<1x32xf32> to vector<64x32xf32>
    %101 = arith.mulf %96, %100 : vector<64x32xf32>
    %102 = arith.addf %95, %101 : vector<64x32xf32>
    %c25 = arith.constant 25 : index
    %c0_35 = arith.constant 0 : index
    %103 = vector.load %arg6[%c25, %c0_35] : memref<96x32xf32, #tpu.memory_space<vmem>>, vector<64x32xf32>
    %104 = vector.broadcast %35 : vector<64x1xf32> to vector<64x32xf32>
    %105 = arith.mulf %103, %104 : vector<64x32xf32>
    %c8_36 = arith.constant 8 : index
    %c0_37 = arith.constant 0 : index
    %106 = vector.load %arg3[%c8_36, %c0_37] : memref<9x32xf32, #tpu.memory_space<vmem>>, vector<1x32xf32>
    %107 = vector.shape_cast %106 : vector<1x32xf32> to vector<32xf32>
    %108 = vector.shape_cast %107 : vector<32xf32> to vector<1x32xf32>
    %109 = vector.broadcast %108 : vector<1x32xf32> to vector<64x32xf32>
    %110 = arith.mulf %105, %109 : vector<64x32xf32>
    %111 = arith.addf %102, %110 : vector<64x32xf32>
    %cst_38 = arith.constant 0.000000e+00 : f32
    %112 = vector.broadcast %cst_38 : f32 to vector<64x32xf32>
    %113 = arith.maximumf %111, %112 : vector<64x32xf32>
    %c0_39 = arith.constant 0 : index
    %c0_40 = arith.constant 0 : index
    %114 = vector.load %arg4[%c0_39, %c0_40] : memref<32x1024xf32, #tpu.memory_space<vmem>>, vector<32x1024xf32>
    %cst_41 = arith.constant dense<0.000000e+00> : vector<64x1024xf32>
    %115 = tpu.matmul %113, %114, %cst_41 {dimension_numbers = #tpu.dot_dimension_numbers<[1], [0], [0], [1], [0, 0, 1, 1], [], []>} : vector<64x32xf32>, vector<32x1024xf32>, vector<64x1024xf32> -> vector<64x1024xf32>
    %cst_42 = arith.constant 0.000000e+00 : f32
    %116 = vector.broadcast %cst_42 : f32 to vector<64x1024xf32>
    %117 = arith.maximumf %115, %116 : vector<64x1024xf32>
    %c0_43 = arith.constant 0 : index
    %c0_44 = arith.constant 0 : index
    %c0_45 = arith.constant 0 : index
    %118 = vector.load %arg5[%c0_43, %c0_44, %c0_45] : memref<1x64x1024xf32, #tpu.memory_space<vmem>>, vector<1x64x1024xf32>
    %119 = vector.shape_cast %118 : vector<1x64x1024xf32> to vector<64x1024xf32>
    %120 = vector.shape_cast %117 : vector<64x1024xf32> to vector<1x64x1024xf32>
    tpu.vector_store %arg5[%c0_43, %c0_44, %c0_45], %120 {strides = array<i32>} : memref<1x64x1024xf32, #tpu.memory_space<vmem>>, vector<1x64x1024xf32>,
    return
  }
  func.func @transform_0(%arg0: i32) -> (i32, i32, i32) {
    %c0_i32 = arith.constant 0 : i32
    %c0_i32_0 = arith.constant 0 : i32
    %c0_i32_1 = arith.constant 0 : i32
    return %arg0, %c0_i32, %c0_i32_0 : i32, i32, i32
  }
  func.func @transform_1(%arg0: i32) -> (i32, i32) {
    %c0_i32 = arith.constant 0 : i32
    %c0_i32_0 = arith.constant 0 : i32
    %c0_i32_1 = arith.constant 0 : i32
    return %c0_i32, %c0_i32_0 : i32, i32
  }
  func.func @transform_2(%arg0: i32) -> (i32, i32) {
    %c0_i32 = arith.constant 0 : i32
    %c0_i32_0 = arith.constant 0 : i32
    %c0_i32_1 = arith.constant 0 : i32
    return %c0_i32, %c0_i32_0 : i32, i32
  }
  func.func @transform_3(%arg0: i32) -> (i32, i32) {
    %c0_i32 = arith.constant 0 : i32
    %c0_i32_0 = arith.constant 0 : i32
    %c0_i32_1 = arith.constant 0 : i32
    return %c0_i32, %c0_i32_0 : i32, i32
  }
  func.func @transform_4(%arg0: i32) -> (i32, i32, i32) {
    %c0_i32 = arith.constant 0 : i32
    %c0_i32_0 = arith.constant 0 : i32
    %c0_i32_1 = arith.constant 0 : i32
    return %arg0, %c0_i32, %c0_i32_0 : i32, i32, i32
  }
}

</mosaic_0001>

<bundles_post_ra>
// kernel: mobilenet_tens_forward.1
= control target key start
LH: loop header
LB: loop body
LE: loop exit
PB: predicated region body
PF: predicated region fallthrough
CT: control target
= control target key end

     0   :  { %9 = vsyncpa [#allocation4], 0  ;;  %s2473_s0 = inlined_call_operand.vmem [shape: f32[2,64,16], index: 0, kind: input, shape index: {}]   ;;  %s2474_s1 = inlined_call_operand.vmem [shape: f32[16,32], index: 1, kind: input, shape index: {}]   ;;  %s2475_s2 = inlined_call_operand.vmem [shape: f32[9,32], index: 2, kind: input, shape index: {}]   ;;  %s2476_s3 = inlined_call_operand.vmem [shape: f32[32,1024], index: 3, kind: input, shape index: {}]   ;;  %s2477_s4 = inlined_call_operand.hbm [shape: f32[2,64,1024], index: 4, kind: output, shape index: {}]  }
   0x1   :  { %11 = vsyncpa [#allocation4 + $0x1], 0  ;;  %s1739_s15 = smov 0   ;;  %s1741_s16 = smov 0  }
   0x2   :  { %s1743_s17 = smov 0   ;;  %s1745_s18 = smov 0  }
   0x3 LB: > { %s1760_s19 = sadd.s32 4294967295, %s1708_s18   ;;  %s1497_s20 = sadd.s32 4294967294, %s1708_s18   ;;  %s1708_s18 = sphi %s1745_s18, %s2513_s18   ;;  %s1704_s17 = sphi %s1743_s17, %s2512_s17   ;;  %s1700_s16 = sphi %s1741_s16, %s2511_s16   ;;  %s1696_s15 = sphi %s1739_s15, %s2510_s15  }
   0x4   : > { %s1764_s21 = sadd.s32 1, %s1708_s18   ;;  %s113_s22 = sadd.s32 1, %s1704_s17 }
   0x5   : > { %s110_s23 = ssub.s32 %s1708_s18, %s1764_s21  ;;  %p123_p0 = scmp.ne.s32.totalorder %s1704_s17, %s1700_s16 }
   0x6   : > { %p111_p1 = scmp.eq.s32.totalorder %s110_s23, 0  ;;  %p124_p2 = scmp.eq.s32.totalorder %s1760_s19, 1 }
   0x7   : > { %p129_p3 = scmp.ne.s32.totalorder %s1700_s16, %s1696_s15  ;;  %p130_p4 = scmp.eq.s32.totalorder %s1497_s20, 1 }
   0x8   : > { %s1775_s24 = scalar_select %p111_p1, %s1704_s17, %s113_s22  }
   0x9   : > { %p1777_p5 = por %p124_p2, %p123_p0  ;;  %p1781_p6 = por %p130_p4, %p129_p3 }
   0xa   : > { %p1500_p7 = scmp.ge.s32.totalorder %s1708_s18, 1  ;;  %p165_p8 = scmp.lt.s32.totalorder %s1708_s18, 3 }
   0xc   : > { %p166_p9 = pnand %p1500_p7, %p165_p8 }
   0xd   : > { %p191_p10 = scmp.lt.s32.totalorder (!%p166_p9), %s1760_s19, 1  ;;  %s188_s7 = sand.u32 (!%p166_p9), 1, %s1700_s16  }
   0xe   : > { %169 = sbr.rel (%p166_p9) target bundleno = 534 (0x216), region = 36  ;;  %s1501_s8 = sshll.u32 (!%p166_p9), %s188_s7, 9 }
   0xf   : > { %s1575_s10 = sshll.u32 (!%p166_p9), %s1760_s19, 13  ;;  %s1711_s22 = smov (!%p166_p9), [#allocation3]  }
  0x10   : > { %s2423_s14 = scalar_lea.hbm (!%p166_p9), %s2477_s4, %s1575_s10  ;;  %s1652_s23 = sshll.u32 (!%p166_p9), %s1711_s22, 4  ;;  %s1653_s23 = int_to_ptr.vmem [resolvable:$false] %s1652_s23 }
  0x11   : > { %s1654_s27 = scalar_lea.vmem (!%p166_p9), %s1653_s23, 16384 }
  0x13   : > { %v205_v0 = vld [vmem:[%s2474_s1 + $0x8] sm:$0xff]  ;;  %v204_v1 = vld [vmem:[%s2474_s1] sm:$0xff]  ;;  %s192_s5 = scalar_select %p191_p10, %s1760_s19, 1  ;;  %vm206_vm0 = vcmask 130048   ;;  %vm344_vm1 = vcmask 261120   ;;  %v1710_v10 = vmov 0.0   ;;  %v357_v29 = vlaneseq }
  0x14   : > { %1586 = vmatprep.subr.mxu0 %v205_v0  ;;  %1602 = vmatprep.subr.mxu1 %v205_v0  ;;  %345 = vst.msk [vmem:[#allocation2] sm:$0xff] %vm344_vm1, %v1710_v10  ;;  %346 = vst.msk [vmem:[#allocation2 + $0x8] sm:$0xff] %vm344_vm1, %v1710_v10  ;;  %v810_v11 = vld [vmem:[%s2476_s3 + $0xc8] sm:$0xff]  ;;  %v812_v12 = vld [vmem:[%s2476_s3 + $0xd8] sm:$0xff]  ;;  %s2433_s19 = scalar_lea.sflag [#allocation4], %s188_s7 }
  0x15   : > { %1587 = vmatpush3.msra.mxu0 %v205_v0  ;;  %1604 = vmatpush3.msra.mxu1 %v205_v0  ;;  %s1574_s6 = sshll.u32 %s192_s5, 6  ;;  %347 = vst.msk [vmem:[#allocation2 + $0x50] sm:$0xff] %vm344_vm1, %v1710_v10  ;;  %348 = vst.msk [vmem:[#allocation2 + $0x58] sm:$0xff] %vm344_vm1, %v1710_v10  ;;  %v809_v13 = vld [vmem:[%s2476_s3 + $0xc0] sm:$0xff]  ;;  %v811_v14 = vld [vmem:[%s2476_s3 + $0xd0] sm:$0xff]  ;;  %v1870_v30 = vshrl.u32 %v357_v29, 7 }
  0x16   : > { %1588 = vmatprep.subr.mxu0 %v204_v1  ;;  %1603 = vmatprep.subr.mxu1 %v204_v1  ;;  %s195_s9 = scalar_lea.vmem %s2473_s0, %s1574_s6  ;;  %v802_v15 = vld [vmem:[%s2476_s3 + $0x88] sm:$0xff]  ;;  %v804_v16 = vld [vmem:[%s2476_s3 + $0x98] sm:$0xff]  ;;  %v801_v17 = vld [vmem:[%s2476_s3 + $0x80] sm:$0xff] }
  0x17   : > { %1589 = vmatpush3.msra.mxu0 %v204_v1  ;;  %1605 = vmatpush3.msra.mxu1 %v204_v1  ;;  %v196_v2 = vld [vmem:[%s195_s9] sm:$0xff]  ;;  %v197_v3 = vld [vmem:[%s195_s9 + $0x8] sm:$0xff]  ;;  %v198_v4 = vld [vmem:[%s195_s9 + $0x10] sm:$0xff]  ;;  %v370_v31 = vand.u32 7, %v1870_v30  ;;  %v359_v32 = vadd.s32 8, %v1870_v30  ;;  %v360_v33 = vadd.s32 16, %v1870_v30 }
  0x18   : > { %1590 = vmatprep.mubr.msk.f32.mxu0 %vm206_vm0, %v196_v2  ;;  %v200_v5 = vld [vmem:[%s195_s9 + $0x20] sm:$0xff]  ;;  %v201_v6 = vld [vmem:[%s195_s9 + $0x28] sm:$0xff]  ;;  %v202_v7 = vld [vmem:[%s195_s9 + $0x30] sm:$0xff]  ;;  %865 = vmatprep.subr.mxu1 %v810_v11  ;;  %v361_v36 = vadd.s32 24, %v1870_v30  ;;  %v362_v37 = vadd.s32 32, %v1870_v30  ;;  %v363_v39 = vadd.s32 40, %v1870_v30 }
  0x19   : > { %1591 = vmatmul.mubr.msk.f32.vlgmr.msra.gmra.mxu0 %vm206_vm0, %v197_v3  ;;  %1596 = vmatprep.mubr.msk.f32.mxu1 %vm206_vm0, %v200_v5  ;;  %v199_v8 = vld [vmem:[%s195_s9 + $0x18] sm:$0xff]  ;;  %v803_v18 = vld [vmem:[%s2476_s3 + $0x90] sm:$0xff]  ;;  %v794_v19 = vld [vmem:[%s2476_s3 + $0x48] sm:$0xff]  ;;  %vm462_vm2 = vcmp.ne.s32.totalorder %v370_v31, 0  ;;  %v377_v42 = vand.u32 7, %v359_v32  ;;  %v384_v43 = vand.u32 7, %v360_v33 }
  0x1a   : > { %1593 = vmatprep.mubr.msk.f32.mxu0 %vm206_vm0, %v198_v4  ;;  %1597 = vmatmul.mubr.msk.f32.vlgmr.msra.gmra.mxu1 %vm206_vm0, %v201_v6  ;;  %v203_v9 = vld [vmem:[%s195_s9 + $0x38] sm:$0xff]  ;;  %v793_v21 = vld [vmem:[%s2476_s3 + $0x40] sm:$0xff]  ;;  %v795_v22 = vld [vmem:[%s2476_s3 + $0x50] sm:$0xff]  ;;  %v1876_v34 = vsel %vm462_vm2, 1.0, %v1710_v10  ;;  %v391_v51 = vand.u32 7, %v361_v36  ;;  %v398_v52 = vand.u32 7, %v362_v37 }
  0x1b   : > { %1599 = vmatprep.mubr.msk.f32.mxu1 %vm206_vm0, %v202_v7  ;;  %978 = vmatprep.subr.mxu0 %v812_v12  ;;  %v796_v20 = vld [vmem:[%s2476_s3 + $0x58] sm:$0xff]  ;;  %v786_v23 = vld [vmem:[%s2476_s3 + $0x8] sm:$0xff]  ;;  %v785_v25 = vld [vmem:[%s2476_s3] sm:$0xff]  ;;  %vm1889_vm3 = vcmp.ne.s32.totalorder %v370_v31, 7  ;;  %v405_v56 = vand.u32 7, %v363_v39  ;;  %vm1899_vm4 = vcmp.ne.s32.totalorder %v377_v42, 0 }
  0x1c   : > { %866 = vmatpush1.msra.mxu1 %v809_v13  ;;  %979 = vmatpush1.msra.mxu0 %v811_v14  ;;  %v788_v24 = vld [vmem:[%s2476_s3 + $0x18] sm:$0xff]  ;;  %v787_v26 = vld [vmem:[%s2476_s3 + $0x10] sm:$0xff]  ;;  %v814_v27 = vld [vmem:[%s2476_s3 + $0xe8] sm:$0xff]  ;;  %vm1903_vm5 = vcmp.ne.s32.totalorder %v377_v42, 7  ;;  %vm1907_vm6 = vcmp.ne.s32.totalorder %v384_v43, 0  ;;  %vm1914_vm7 = vcmp.ne.s32.totalorder %v384_v43, 7 }
  0x1d   : > { %1594 = vmatmul.mubr.msk.f32.gmra.mxu0 %vm206_vm0, %v199_v8  ;;  %867 = vmatprep.subr.mxu1 %v802_v15  ;;  %v816_v28 = vld [vmem:[%s2476_s3 + $0xf8] sm:$0xff]  ;;  %v510_v35 = vld [vmem:[#allocation2 + $0x7] sm:$0xff]  ;;  %v1886_v49 = vld [vmem:[%s2475_s2] ss:$0 sm:$0xff]  ;;  %vm1919_vm8 = vcmp.ne.s32.totalorder %v391_v51, 0  ;;  %vm1923_vm9 = vcmp.ne.s32.totalorder %v391_v51, 7 }
  0x1e   : > { %1600 = vmatmul.mubr.msk.f32.gmra.mxu1 %vm206_vm0, %v203_v9  ;;  %1018 = vmatprep.mubr.f32.mxu0 %v1710_v10  ;;  %v518_v46 = vmul.f32 %v1876_v34, %v510_v35  ;;  %v547_v50 = vld [vmem:[#allocation2 + $0x8] sm:$0xff]  ;;  %v1897_v59 = vld [vmem:[%s2475_s2 + $0x1] ss:$0 sm:$0xff]  ;;  %vm1927_vm10 = vcmp.ne.s32.totalorder %v398_v52, 0  ;;  %vm1932_vm11 = vcmp.ne.s32.totalorder %v398_v52, 7  ;;  %vm1936_vm12 = vcmp.ne.s32.totalorder %v405_v56, 0 }
  0x1f   : > { %905 = vmatprep.mubr.f32.mxu1 %v1710_v10  ;;  %980 = vmatprep.subr.mxu0 %v804_v16  ;;  %v560_v2 = vmul.f32 %v1897_v59, %v547_v50  ;;  %v1941_v13 = vadd.s32 48, %v1870_v30  ;;  %v1520_v14 = vsel %vm1889_vm3, 1.0, %v1710_v10  ;;  %v1950_v15 = vld [vmem:[%s2475_s2 + $0x7] ss:$0 sm:$0xff]  ;;  %v1513_v16 = vsel %vm1899_vm4, 1.0, %v1710_v10  ;;  %s2356_s9 = scalar_lea.vmem [#allocation3], %s1501_s8 }
  0x20   : > { %868 = vmatpush1.msra.mxu1 %v801_v17  ;;  %981 = vmatpush1.msra.mxu0 %v803_v18  ;;  %v531_v1 = vmul.f32 %v1886_v49, %v518_v46  ;;  %v1521_v17 = vsel %vm1903_vm5, 1.0, %v1710_v10  ;;  %vm1958_vm13 = vcmp.ne.s32.totalorder %v405_v56, 7  ;;  %v2003_v29 = vsel %vm1936_vm12, 1.0, %v1710_v10  ;;  %v2038_v52 = vld [vmem:[%s2475_s2 + $0x6] ss:$0 sm:$0xff]  ;;  %s1435_s11 = sshll.u32 %s2356_s9, 4  ;;  %s2425_s11 = int_to_ptr.vmem [resolvable:$true] %s1435_s11 }
  0x21   : > { %869 = vmatprep.subr.mxu1 %v794_v19  ;;  %982 = vmatprep.subr.mxu0 %v796_v20  ;;  %v2011_v36 = vsel %vm1958_vm13, 1.0, %v1710_v10  ;;  %v2014_v37 = vadd.s32 56, %v1870_v30  ;;  %v2028_v30 = vld [vmem:[%s2475_s2 + $0x3] ss:$0 sm:$0xff]  ;;  %v2060_v7 = vld [vmem:[%s2475_s2 + $0x8] ss:$0 sm:$0xff]  ;;  %p1655_p0 = scmp.lt.s32.totalorder %s2425_s11, %s1653_s23 }
  0x22   : > { %870 = vmatpush1.msra.mxu1 %v793_v21  ;;  %983 = vmatpush1.msra.mxu0 %v795_v22  ;;  %v568_v20 = vadd.f32 %v560_v2, %v531_v1  ;;  %v1966_v21 = vld [vmem:[%s2475_s2 + $0x4] ss:$0 sm:$0xff]  ;;  %v1971_v22 = vsel %vm1907_vm6, 1.0, %v1710_v10  ;;  %s1648_s20 = scalar_lea.vmem %s2425_s11, 8192 }
  0x23   : > { %871 = vmatprep.subr.mxu1 %v786_v23  ;;  %984 = vmatprep.subr.mxu0 %v788_v24  ;;  %v1976_v23 = vsel %vm1914_vm7, 1.0, %v1710_v10  ;;  %v1981_v24 = vsel %vm1919_vm8, 1.0, %v1710_v10  ;;  %p1649_p11 = scmp.ne.s32.totalorder %s2425_s11, %s1648_s20  ;;  %p1656_p1 = scmp.lt.s32.totalorder %s1654_s27, %s1648_s20 }
  0x24   : > { %872 = vmatpush1.msra.mxu1 %v785_v25  ;;  %985 = vmatpush1.msra.mxu0 %v787_v26  ;;  %v1986_v25 = vsel %vm1923_vm9, 1.0, %v1710_v10  ;;  %v1991_v26 = vsel %vm1927_vm10, 1.0, %v1710_v10 }
  0x25   : > { %1091 = vmatprep.subr.mxu1 %v814_v27  ;;  %1204 = vmatprep.subr.mxu0 %v816_v28  ;;  %v1996_v27 = vsel %vm1932_vm11, 1.0, %v1710_v10  ;;  %p1650_p12 = pnand %p1649_p11, %p1777_p5  ;;  %p1657_p2 = por %p1656_p1, %p1655_p0 }
  0x27   : > { %p1651_p13 = pneg %p1650_p12 }
  0x29   : > { %p1658_p3 = pnand %p1657_p2, %p1651_p13 }
  0xd9   : > { %v1592_v38 = vpop.f32.mrf.mxu0 }
  0xda   : > { %v337_v40 = vmax.f32 %v1592_v38, 0.0  ;;  %v1598_v41 = vpop.f32.mrf.mxu1  ;;  %v412_v38 = vand.u32 7, %v1941_v13 }
  0xdb   : > { %v297_v44 = vpop.f32.mrf.mxu0  ;;  %v341_v45 = vmax.f32 %v1598_v41, 0.0  ;;  %v2020_v41 = vld [vmem:[%s2475_s2 + $0x2] ss:$0 sm:$0xff] }
  0xdc   : > { %350 = vst.msk [vmem:[#allocation2 + $0x18] sm:$0xff] %vm344_vm1, %v337_v40  ;;  %v336_v47 = vmax.f32 %v297_v44, 0.0  ;;  %v317_v48 = vpop.f32.mrf.mxu1  ;;  %vm2128_vm14 = vcmp.ne.s32.totalorder %v412_v38, 0  ;;  %vm2170_vm15 = vcmp.ne.s32.totalorder %v412_v38, 7 }
  0xdd   : > { %v1595_v53 = vpop.f32.mrf.mxu0  ;;  %354 = vst.msk [vmem:[#allocation2 + $0x38] sm:$0xff] %vm344_vm1, %v341_v45  ;;  %v340_v54 = vmax.f32 %v317_v48, 0.0 }
  0xde   : > { %349 = vst.msk [vmem:[#allocation2 + $0x10] sm:$0xff] %vm344_vm1, %v336_v47  ;;  %v339_v57 = vmax.f32 %v1595_v53, 0.0  ;;  %v1601_v58 = vpop.f32.mrf.mxu1 }
  0xdf   : > { %v307_v63 = vpop.f32.mrf.mxu0  ;;  %353 = vst.msk [vmem:[#allocation2 + $0x30] sm:$0xff] %vm344_vm1, %v340_v54  ;;  %v343_v0 = vmax.f32 %v1601_v58, 0.0  ;;  %v2047_v58 = vld [vmem:[%s2475_s2 + $0x5] ss:$0 sm:$0xff] }
  0xe0   : > { %352 = vst.msk [vmem:[#allocation2 + $0x28] sm:$0xff] %vm344_vm1, %v339_v57  ;;  %v338_v4 = vmax.f32 %v307_v63, 0.0  ;;  %v327_v5 = vpop.f32.mrf.mxu1 }
  0xe1   : > { %356 = vst.msk [vmem:[#allocation2 + $0x48] sm:$0xff] %vm344_vm1, %v343_v0  ;;  %v342_v9 = vmax.f32 %v327_v5, 0.0 }
  0xe2   : > { %351 = vst.msk [vmem:[#allocation2 + $0x20] sm:$0xff] %vm344_vm1, %v338_v4 }
  0xe3   : > { %355 = vst.msk [vmem:[#allocation2 + $0x40] sm:$0xff] %vm344_vm1, %v342_v9  ;;  %v549_v19 = vld [vmem:[#allocation2 + $0x18] sm:$0xff] }
  0xe4   : > { %v1998_v28 = vld [vmem:[#allocation2 + $0x38] sm:$0xff]  ;;  %v2006_v35 = vmul.f32 %v1950_v15, %v549_v19  ;;  %v650_v44 = vmul.f32 %v1966_v21, %v549_v19  ;;  %v562_v45 = vmul.f32 %v1897_v59, %v549_v19 }
  0xe5   : > { %v511_v31 = vld [vmem:[#allocation2 + $0xf] sm:$0xff]  ;;  %v512_v32 = vld [vmem:[#allocation2 + $0x17] sm:$0xff]  ;;  %v2033_v50 = vmul.f32 %v1897_v59, %v1998_v28  ;;  %v2052_v62 = vmul.f32 %v1966_v21, %v1998_v28 }
  0xe6   : > { %v548_v33 = vld [vmem:[#allocation2 + $0x10] sm:$0xff]  ;;  %v614_v42 = vmul.f32 %v1876_v34, %v511_v31  ;;  %v519_v43 = vmul.f32 %v1513_v16, %v511_v31  ;;  %v696_v47 = vmul.f32 %v1876_v34, %v512_v32  ;;  %v615_v55 = vmul.f32 %v1513_v16, %v512_v32 }
  0xe7   : > { %v576_v39 = vld [vmem:[#allocation2 + $0x9] sm:$0xff]  ;;  %v577_v40 = vld [vmem:[#allocation2 + $0x11] sm:$0xff]  ;;  %v561_v54 = vmul.f32 %v1897_v59, %v548_v33  ;;  %v649_v34 = vmul.f32 %v1966_v21, %v548_v33  ;;  %v520_v61 = vmul.f32 %v1971_v22, %v512_v32 }
  0xe8   : > { %v584_v46 = vmul.f32 %v1520_v14, %v576_v39  ;;  %v585_v48 = vmul.f32 %v1521_v17, %v577_v40  ;;  %v666_v51 = vmul.f32 %v1520_v14, %v577_v40  ;;  %v532_v53 = vmul.f32 %v1886_v49, %v519_v43 }
  0xe9   : > { %v578_v56 = vld [vmem:[#allocation2 + $0x19] sm:$0xff]  ;;  %v627_v63 = vmul.f32 %v2028_v30, %v614_v42  ;;  %v579_v3 = vld [vmem:[#allocation2 + $0x21] sm:$0xff]  ;;  %v709_v6 = vmul.f32 %v2038_v52, %v696_v47  ;;  %v533_v32 = vmul.f32 %v1886_v49, %v520_v61 }
  0xea   : > { %v597_v57 = vmul.f32 %v2020_v41, %v584_v46  ;;  %v513_v60 = vld [vmem:[#allocation2 + $0x1f] sm:$0xff]  ;;  %v748_v0 = vmul.f32 %v1520_v14, %v578_v56  ;;  %v569_v2 = vadd.f32 %v561_v54, %v532_v53  ;;  %v598_v4 = vmul.f32 %v2020_v41, %v585_v48  ;;  %v551_v42 = vld [vmem:[#allocation2 + $0x28] sm:$0xff] }
  0xeb   : > { %v550_v1 = vld [vmem:[#allocation2 + $0x20] sm:$0xff]  ;;  %v667_v8 = vmul.f32 %v1521_v17, %v578_v56  ;;  %v697_v9 = vmul.f32 %v1513_v16, %v513_v60  ;;  %v679_v11 = vmul.f32 %v2047_v58, %v666_v51  ;;  %v628_v14 = vmul.f32 %v2028_v30, %v615_v55  ;;  %v580_v54 = vld [vmem:[#allocation2 + $0x29] sm:$0xff] }
  0xec   : > { %v605_v5 = vadd.f32 %v597_v57, %v568_v20  ;;  %v606_v12 = vadd.f32 %v598_v4, %v569_v2  ;;  %v749_v18 = vmul.f32 %v1521_v17, %v579_v3  ;;  %v563_v31 = vmul.f32 %v1897_v59, %v550_v1  ;;  %v514_v61 = vld [vmem:[#allocation2 + $0x27] sm:$0xff] }
  0xed   : > { %v651_v20 = vmul.f32 %v1966_v21, %v550_v1  ;;  %v761_v33 = vmul.f32 %v2060_v7, %v748_v0  ;;  %v732_v40 = vmul.f32 %v1950_v15, %v550_v1  ;;  %v586_v16 = vmul.f32 %v1976_v23, %v578_v56 }
  0xee   : > { %v635_v19 = vadd.f32 %v627_v63, %v605_v5  ;;  %v636_v39 = vadd.f32 %v628_v14, %v606_v12  ;;  %v680_v46 = vmul.f32 %v2047_v58, %v667_v8  ;;  %v710_v17 = vmul.f32 %v2038_v52, %v697_v9  ;;  %v552_v12 = vld [vmem:[#allocation2 + $0x30] sm:$0xff] }
  0xef   : > { %v616_v47 = vmul.f32 %v1971_v22, %v513_v60  ;;  %v762_v51 = vmul.f32 %v2060_v7, %v749_v18  ;;  %v570_v53 = vadd.f32 %v562_v45, %v533_v32  ;;  %v599_v55 = vmul.f32 %v2020_v41, %v586_v16 }
  0xf0   : > { %v657_v43 = vadd.f32 %v649_v34, %v635_v19  ;;  %v658_v48 = vadd.f32 %v650_v44, %v636_v39  ;;  %v2076_v63 = vmul.f32 %v1897_v59, %v551_v42  ;;  %v652_v56 = vmul.f32 %v1966_v21, %v551_v42 }
  0xf1   : > { %v668_v34 = vmul.f32 %v1976_v23, %v579_v3  ;;  %v607_v1 = vadd.f32 %v599_v55, %v570_v53  ;;  %v629_v2 = vmul.f32 %v2028_v30, %v616_v47  ;;  %v698_v44 = vmul.f32 %v1971_v22, %v514_v61  ;;  %v581_v55 = vld [vmem:[#allocation2 + $0x31] sm:$0xff] }
  0xf2   : > { %v687_v57 = vadd.f32 %v679_v11, %v657_v43  ;;  %v688_v0 = vadd.f32 %v680_v46, %v658_v48  ;;  %v733_v45 = vmul.f32 %v1950_v15, %v551_v42  ;;  %v750_v5 = vmul.f32 %v1976_v23, %v580_v54 }
  0xf3   : > { %v521_v8 = vmul.f32 %v1981_v24, %v513_v60  ;;  %v637_v11 = vadd.f32 %v629_v2, %v607_v1  ;;  %v587_v14 = vmul.f32 %v1986_v25, %v579_v3  ;;  %v617_v18 = vmul.f32 %v1981_v24, %v514_v61 }
  0xf4   : > { %v717_v4 = vadd.f32 %v709_v6, %v687_v57  ;;  %v718_v9 = vadd.f32 %v710_v17, %v688_v0  ;;  %v681_v32 = vmul.f32 %v2047_v58, %v668_v34  ;;  %v669_v6 = vmul.f32 %v1986_v25, %v580_v54 }
  0xf5   : > { %v534_v22 = vmul.f32 %v1886_v49, %v521_v8  ;;  %v659_v42 = vadd.f32 %v651_v20, %v637_v11  ;;  %v711_v23 = vmul.f32 %v2038_v52, %v698_v44  ;;  %v600_v60 = vmul.f32 %v2020_v41, %v587_v14 }
  0xf6   : > { %v739_v19 = vadd.f32 %v2006_v35, %v717_v4  ;;  %v740_v39 = vadd.f32 %v732_v40, %v718_v9  ;;  %v763_v43 = vmul.f32 %v2060_v7, %v750_v5  ;;  %v2095_v3 = vmul.f32 %v1897_v59, %v552_v12  ;;  %v813_v35 = vld [vmem:[%s2476_s3 + $0xe0] sm:$0xff] }
  0xf7   : > { %v571_v46 = vadd.f32 %v563_v31, %v534_v22  ;;  %v689_v17 = vadd.f32 %v681_v32, %v659_v42  ;;  %v630_v47 = vmul.f32 %v2028_v30, %v617_v18  ;;  %v2102_v20 = vmul.f32 %v1966_v21, %v552_v12  ;;  %v515_v31 = vld [vmem:[#allocation2 + $0x2f] sm:$0xff]  ;;  %v805_v22 = vld [vmem:[%s2476_s3 + $0xa0] sm:$0xff] }
  0xf8   : > { %v769_v16 = vadd.f32 %v761_v33, %v739_v19  ;;  %v682_v40 = vmul.f32 %v2047_v58, %v669_v6  ;;  %v815_v33 = vld [vmem:[%s2476_s3 + $0xf0] sm:$0xff]  ;;  %v770_v53 = vadd.f32 %v762_v51, %v740_v39  ;;  %v522_v34 = vmul.f32 %v1991_v26, %v514_v61  ;;  %v806_v51 = vld [vmem:[%s2476_s3 + $0xa8] sm:$0xff]  ;;  %v808_v61 = vld [vmem:[%s2476_s3 + $0xb8] sm:$0xff] }
  0xf9   : > { %v608_v57 = vadd.f32 %v600_v60, %v571_v46  ;;  %v719_v0 = vadd.f32 %v711_v23, %v689_v17  ;;  %v699_v1 = vmul.f32 %v1981_v24, %v515_v31  ;;  %v751_v2 = vmul.f32 %v1986_v25, %v581_v55  ;;  %v2148_v39 = vld [vmem:[#allocation2 + $0x37] sm:$0xff]  ;;  %v798_v42 = vld [vmem:[%s2476_s3 + $0x68] sm:$0xff] }
  0xfa   : > { %v2105_v48 = vmax.f32 %v769_v16, 0.0  ;;  %v588_v44 = vmul.f32 %v1996_v27, %v580_v54  ;;  %v535_v24 = vmul.f32 %v1886_v49, %v522_v34  ;;  %v618_v25 = vmul.f32 %v1991_v26, %v515_v31  ;;  %v800_v23 = vld [vmem:[%s2476_s3 + $0x78] sm:$0xff] }
  0xfb   : > { %v638_v4 = vadd.f32 %v630_v47, %v608_v57  ;;  %v741_v5 = vadd.f32 %v733_v45, %v719_v0  ;;  %v670_v9 = vmul.f32 %v1996_v27, %v581_v55  ;;  %v419_v11 = vand.u32 7, %v2014_v37  ;;  %v807_v37 = vld [vmem:[%s2476_s3 + $0xb0] sm:$0xff] }
  0xfc   : > { %1537 = vmatmul.mubr.msk.f32.vlgmr.msra.gmra.mxu1 %vm344_vm1, %v2105_v48  ;;  %1545 = vmatmul.mubr.msk.f32.vlgmr.msra.gmra.mxu0 %vm344_vm1, %v2105_v48  ;;  %v601_v8 = vmul.f32 %v2020_v41, %v588_v44  ;;  %v2137_v14 = vmax.f32 %v770_v53, 0.0  ;;  %v734_v19 = vmul.f32 %v1950_v15, %v552_v12  ;;  %v572_v32 = vadd.f32 %v2076_v63, %v535_v24  ;;  %v797_v53 = vld [vmem:[%s2476_s3 + $0x60] sm:$0xff] }
  0xfd   : > { %1092 = vmatpush1.msra.mxu1 %v813_v35  ;;  %1205 = vmatpush1.msra.mxu0 %v815_v33  ;;  %v660_v18 = vadd.f32 %v652_v56, %v638_v4  ;;  %v771_v45 = vadd.f32 %v763_v43, %v741_v5  ;;  %v712_v6 = vmul.f32 %v2038_v52, %v699_v1  ;;  %v2154_v63 = vsel %vm2128_vm14, 1.0, %v1710_v10  ;;  %v2177_v35 = vld [vmem:[#allocation2 + $0x39] sm:$0xff]  ;;  %v665_v1 = vld [vmem:[#allocation2 + $0x49] sm:$0xff] }
  0xfe   : > { %911 = vmatprep.mubr.f32.mxu1 %v1710_v10  ;;  %1024 = vmatprep.mubr.f32.mxu0 %v1710_v10  ;;  %v631_v56 = vmul.f32 %v2028_v30, %v618_v25  ;;  %v609_v60 = vadd.f32 %v601_v8, %v572_v32  ;;  %v700_v16 = vmul.f32 %v1991_v26, %v2148_v39  ;;  %vm2181_vm0 = vcmp.ne.s32.totalorder %v419_v11, 0  ;;  %v792_v25 = vld [vmem:[%s2476_s3 + $0x38] sm:$0xff]  ;;  %v789_v5 = vld [vmem:[%s2476_s3 + $0x20] sm:$0xff] }
  0xff   : > { %1093 = vmatprep.subr.mxu1 %v806_v51  ;;  %1206 = vmatprep.subr.mxu0 %v808_v61  ;;  %v690_v12 = vadd.f32 %v682_v40, %v660_v18  ;;  %v764_v46 = vmul.f32 %v2060_v7, %v751_v2  ;;  %v683_v17 = vmul.f32 %v2047_v58, %v670_v9  ;;  %v2185_v13 = vmax.f32 %v771_v45, 0.0  ;;  %v554_v51 = vld [vmem:[#allocation2 + $0x40] sm:$0xff] }
 0x100   : > { %1538 = vmatmul.mubr.msk.f32.gmra.mxu1 %vm344_vm1, %v2137_v14  ;;  %1546 = vmatmul.mubr.msk.f32.gmra.mxu0 %vm344_vm1, %v2137_v14  ;;  %v523_v47 = vmul.f32 %v2003_v29, %v515_v31  ;;  %v639_v40 = vadd.f32 %v631_v56, %v609_v60  ;;  %v752_v33 = vmul.f32 %v1996_v27, %v2177_v35  ;;  %v799_v31 = vld [vmem:[%s2476_s3 + $0x70] sm:$0xff]  ;;  %vm2199_vm2 = vcmp.ne.s32.totalorder %v419_v11, 7 }
 0x101   : > { %917 = vmatprep.mubr.f32.mxu1 %v1710_v10  ;;  %1030 = vmatprep.mubr.f32.mxu0 %v1710_v10  ;;  %v720_v38 = vadd.f32 %v712_v6, %v690_v12  ;;  %v589_v34 = vmul.f32 %v2011_v36, %v581_v55  ;;  %v619_v0 = vmul.f32 %v2003_v29, %v2148_v39  ;;  %v790_v55 = vld [vmem:[%s2476_s3 + $0x28] sm:$0xff]  ;;  %v2215_v61 = vsel %vm2170_vm15, 1.0, %v1710_v10 }
 0x102   : > { %1094 = vmatpush1.msra.mxu1 %v805_v22  ;;  %1207 = vmatpush1.msra.mxu0 %v807_v37  ;;  %v536_v57 = vmul.f32 %v1886_v49, %v523_v47  ;;  %v661_v2 = vadd.f32 %v2102_v20, %v639_v40  ;;  %v713_v44 = vmul.f32 %v2038_v52, %v700_v16  ;;  %v2228_v54 = vsel %vm2181_vm0, 1.0, %v1710_v10 }
 0x103   : > { %1095 = vmatprep.subr.mxu1 %v798_v42  ;;  %1208 = vmatprep.subr.mxu0 %v800_v23  ;;  %v742_v27 = vadd.f32 %v734_v19, %v720_v38  ;;  %v602_v20 = vmul.f32 %v2020_v41, %v589_v34  ;;  %v632_v24 = vmul.f32 %v2028_v30, %v619_v0  ;;  %v2238_v18 = vsel %vm2199_vm2, 1.0, %v1710_v10  ;;  %v791_v19 = vld [vmem:[%s2476_s3 + $0x30] sm:$0xff]  ;;  %v583_v42 = vld [vmem:[#allocation2 + $0x41] sm:$0xff] }
 0x104   : > { %1539 = vmatmul.mubr.msk.f32.gmra.mxu1 %vm344_vm1, %v2185_v13  ;;  %1547 = vmatmul.mubr.msk.f32.gmra.mxu0 %vm344_vm1, %v2185_v13  ;;  %v573_v4 = vadd.f32 %v2095_v3, %v536_v57  ;;  %v691_v9 = vadd.f32 %v683_v17, %v661_v2  ;;  %v517_v3 = vld [vmem:[#allocation2 + $0x3f] sm:$0xff]  ;;  %v671_v11 = vmul.f32 %v2011_v36, %v2177_v35  ;;  %v613_v17 = vld [vmem:[#allocation2 + $0x47] sm:$0xff] }
 0x105   : > { %923 = vmatprep.mubr.f32.mxu1 %v1710_v10  ;;  %1036 = vmatprep.mubr.f32.mxu0 %v1710_v10  ;;  %v772_v8 = vadd.f32 %v764_v46, %v742_v27  ;;  %v735_v32 = vmul.f32 %v1950_v15, %v1998_v28  ;;  %v567_v45 = vmul.f32 %v1897_v59, %v554_v51 }
 0x106   : > { %1096 = vmatpush1.msra.mxu1 %v797_v53  ;;  %1209 = vmatpush1.msra.mxu0 %v799_v31  ;;  %v610_v22 = vadd.f32 %v602_v20, %v573_v4  ;;  %v701_v37 = vmul.f32 %v2003_v29, %v517_v3  ;;  %v721_v56 = vadd.f32 %v713_v44, %v691_v9  ;;  %v643_v4 = vld [vmem:[#allocation2 + $0x48] sm:$0xff] }
 0x107   : > { %1097 = vmatprep.subr.mxu1 %v790_v55  ;;  %v2247_v6 = vmax.f32 %v772_v8, 0.0  ;;  %v765_v12 = vmul.f32 %v2060_v7, %v752_v33  ;;  %1210 = vmatprep.subr.mxu0 %v792_v25  ;;  %v524_v23 = vmul.f32 %v2154_v63, %v2148_v39  ;;  %v684_v28 = vmul.f32 %v2047_v58, %v671_v11 }
 0x108   : > { %1098 = vmatpush1.msra.mxu1 %v789_v5  ;;  %v640_v60 = vadd.f32 %v632_v24, %v610_v22  ;;  %v714_v59 = vmul.f32 %v2038_v52, %v701_v37  ;;  %v753_v16 = vmul.f32 %v2011_v36, %v583_v42  ;;  %1211 = vmatpush1.msra.mxu0 %v791_v19  ;;  %v695_v5 = vld [vmem:[#allocation2 + $0x4f] sm:$0xff] }
 0x109   : > { %1540 = vmatmul.mubr.msk.f32.gmra.mxu1 %vm344_vm1, %v2247_v6  ;;  %1548 = vmatmul.mubr.msk.f32.gmra.mxu0 %vm344_vm1, %v2247_v6  ;;  %v743_v29 = vadd.f32 %v735_v32, %v721_v56  ;;  %v537_v43 = vmul.f32 %v1886_v49, %v524_v23  ;;  %v590_v39 = vmul.f32 %v2215_v61, %v2177_v35 }
 0x10a   : > { %929 = vmatprep.mubr.f32.mxu1 %v1710_v10  ;;  %1042 = vmatprep.mubr.f32.mxu0 %v1710_v10  ;;  %v662_v46 = vadd.f32 %v2052_v62, %v640_v60  ;;  %v591_v36 = vmul.f32 %v2238_v18, %v583_v42  ;;  %v620_v47 = vmul.f32 %v2154_v63, %v517_v3 }
 0x10b   : > { %v773_v26 = vadd.f32 %v765_v12, %v743_v29  ;;  %v525_v38 = vmul.f32 %v2228_v54, %v517_v3  ;;  %v574_v40 = vadd.f32 %v2033_v50, %v537_v43  ;;  %v603_v33 = vmul.f32 %v2020_v41, %v590_v39  ;;  %v747_v12 = vld [vmem:[#allocation2 + $0x51] sm:$0xff] }
 0x10c   : > { %v655_v35 = vmul.f32 %v1966_v21, %v554_v51  ;;  %v692_v53 = vadd.f32 %v684_v28, %v662_v46  ;;  %v736_v31 = vmul.f32 %v1950_v15, %v554_v51  ;;  %v633_v57 = vmul.f32 %v2028_v30, %v620_v47 }
 0x10d   : > { %v2273_v62 = vmax.f32 %v773_v26, 0.0  ;;  %v611_v34 = vadd.f32 %v603_v33, %v574_v40  ;;  %v621_v0 = vmul.f32 %v2228_v54, %v613_v17  ;;  %v672_v27 = vmul.f32 %v2215_v61, %v583_v42 }
 0x10e   : > { %v722_v2 = vadd.f32 %v714_v59, %v692_v53  ;;  %v766_v50 = vmul.f32 %v2060_v7, %v753_v16  ;;  %v604_v44 = vmul.f32 %v2020_v41, %v591_v36  ;;  %v702_v55 = vmul.f32 %v2154_v63, %v613_v17 }
 0x10f   : > { %1541 = vmatmul.mubr.msk.f32.gmra.mxu1 %vm344_vm1, %v2273_v62  ;;  %1549 = vmatmul.mubr.msk.f32.gmra.mxu0 %vm344_vm1, %v2273_v62  ;;  %v641_v51 = vadd.f32 %v633_v57, %v611_v34  ;;  %v685_v20 = vmul.f32 %v2047_v58, %v672_v27  ;;  %v538_v24 = vmul.f32 %v1886_v49, %v525_v38 }
 0x110   : > { %935 = vmatprep.mubr.f32.mxu1 %v1710_v10  ;;  %1048 = vmatprep.mubr.f32.mxu0 %v1710_v10  ;;  %v744_v25 = vadd.f32 %v736_v31, %v722_v2  ;;  %v673_v41 = vmul.f32 %v2238_v18, %v665_v1  ;;  %v754_v63 = vmul.f32 %v2215_v61, %v665_v1 }
 0x111   : > { %v663_v8 = vadd.f32 %v655_v35, %v641_v51  ;;  %v715_v9 = vmul.f32 %v2038_v52, %v702_v55  ;;  %v575_v3 = vadd.f32 %v567_v45, %v538_v24  ;;  %v634_v11 = vmul.f32 %v2028_v30, %v621_v0  ;;  %v725_v30 = vld [vmem:[#allocation2 + $0x50] sm:$0xff] }
 0x112   : > { %v774_v19 = vadd.f32 %v766_v50, %v744_v25  ;;  %v656_v32 = vmul.f32 %v1966_v21, %v643_v4  ;;  %v737_v22 = vmul.f32 %v1950_v15, %v643_v4  ;;  %v703_v56 = vmul.f32 %v2228_v54, %v695_v5 }
 0x113   : > { %v693_v49 = vadd.f32 %v685_v20, %v663_v8  ;;  %v612_v37 = vadd.f32 %v604_v44, %v575_v3  ;;  %v767_v61 = vmul.f32 %v2060_v7, %v754_v63  ;;  %v686_v28 = vmul.f32 %v2047_v58, %v673_v41 }
 0x114   : > { %v782_v42 = vmax.f32 %v774_v19, 0.0  ;;  %v755_v21 = vmul.f32 %v2238_v18, %v747_v12  ;;  %v716_v59 = vmul.f32 %v2038_v52, %v703_v56  ;;  %v738_v43 = vmul.f32 %v1950_v15, %v725_v30 }
 0x115   : > { %v723_v23 = vadd.f32 %v715_v9, %v693_v49  ;;  %v642_v60 = vadd.f32 %v634_v11, %v612_v37 }
 0x116   : > { %1542 = vmatmul.mubr.msk.f32.gmra.mxu1 %vm344_vm1, %v782_v42  ;;  %1550 = vmatmul.mubr.msk.f32.gmra.mxu0 %vm344_vm1, %v782_v42  ;;  %v768_v46 = vmul.f32 %v2060_v7, %v755_v21 }
 0x117   : > { %941 = vmatprep.mubr.f32.mxu1 %v1710_v10  ;;  %1054 = vmatprep.mubr.f32.mxu0 %v1710_v10  ;;  %v745_v54 = vadd.f32 %v737_v22, %v723_v23  ;;  %v664_v45 = vadd.f32 %v656_v32, %v642_v60 }
 0x119   : > { %v775_v16 = vadd.f32 %v767_v61, %v745_v54  ;;  %v694_v29 = vadd.f32 %v686_v28, %v664_v45 }
 0x11b   : > { %v783_v58 = vmax.f32 %v775_v16, 0.0  ;;  %v724_v39 = vadd.f32 %v716_v59, %v694_v29 }
 0x11d   : > { %1543 = vmatmul.mubr.msk.f32.gmra.mxu1 %vm344_vm1, %v783_v58  ;;  %1551 = vmatmul.mubr.msk.f32.gmra.mxu0 %vm344_vm1, %v783_v58  ;;  %v746_v18 = vadd.f32 %v738_v43, %v724_v39 }
 0x11e   : > { %947 = vmatprep.mubr.f32.mxu1 %v1710_v10  ;;  %1060 = vmatprep.mubr.f32.mxu0 %v1710_v10 }
 0x11f   : > { %v776_v36 = vadd.f32 %v768_v46, %v746_v18 }
 0x121   : > { %v784_v17 = vmax.f32 %v776_v36, 0.0 }
 0x123   : > { %1544 = vmatmul.mubr.msk.f32.gmra.mxu1 %vm344_vm1, %v784_v17  ;;  %1552 = vmatmul.mubr.msk.f32.gmra.mxu0 %vm344_vm1, %v784_v17 }
 0x124   : > { %1131 = vmatprep.mubr.f32.mxu1 %v1710_v10  ;;  %1244 = vmatprep.mubr.f32.mxu0 %v1710_v10 }
 0x127   : > { %1553 = vmatmul.mubr.msk.f32.vlgmr.msra.gmra.mxu1 %vm344_vm1, %v2105_v48  ;;  %1561 = vmatmul.mubr.msk.f32.vlgmr.msra.gmra.mxu0 %vm344_vm1, %v2105_v48 }
 0x128   : > { %1137 = vmatprep.mubr.f32.mxu1 %v1710_v10  ;;  %1250 = vmatprep.mubr.f32.mxu0 %v1710_v10 }
 0x12b   : > { %1554 = vmatmul.mubr.msk.f32.gmra.mxu1 %vm344_vm1, %v2137_v14  ;;  %1562 = vmatmul.mubr.msk.f32.gmra.mxu0 %vm344_vm1, %v2137_v14 }
 0x12c   : > { %1143 = vmatprep.mubr.f32.mxu1 %v1710_v10  ;;  %1256 = vmatprep.mubr.f32.mxu0 %v1710_v10 }
 0x12f   : > { %1555 = vmatmul.mubr.msk.f32.gmra.mxu1 %vm344_vm1, %v2185_v13  ;;  %1563 = vmatmul.mubr.msk.f32.gmra.mxu0 %vm344_vm1, %v2185_v13 }
 0x130   : > { %1149 = vmatprep.mubr.f32.mxu1 %v1710_v10  ;;  %1262 = vmatprep.mubr.f32.mxu0 %v1710_v10 }
 0x133   : > { %1556 = vmatmul.mubr.msk.f32.gmra.mxu1 %vm344_vm1, %v2247_v6  ;;  %1564 = vmatmul.mubr.msk.f32.gmra.mxu0 %vm344_vm1, %v2247_v6 }
 0x134   : > { %1155 = vmatprep.mubr.f32.mxu1 %v1710_v10  ;;  %1268 = vmatprep.mubr.f32.mxu0 %v1710_v10 }
 0x137   : > { %1557 = vmatmul.mubr.msk.f32.gmra.mxu1 %vm344_vm1, %v2273_v62  ;;  %1565 = vmatmul.mubr.msk.f32.gmra.mxu0 %vm344_vm1, %v2273_v62 }
 0x138   : > { %1161 = vmatprep.mubr.f32.mxu1 %v1710_v10  ;;  %1274 = vmatprep.mubr.f32.mxu0 %v1710_v10 }
 0x13b   : > { %1558 = vmatmul.mubr.msk.f32.gmra.mxu1 %vm344_vm1, %v782_v42  ;;  %1566 = vmatmul.mubr.msk.f32.gmra.mxu0 %vm344_vm1, %v782_v42 }
 0x13c   : > { %1167 = vmatprep.mubr.f32.mxu1 %v1710_v10  ;;  %1280 = vmatprep.mubr.f32.mxu0 %v1710_v10 }
 0x13f   : > { %1559 = vmatmul.mubr.msk.f32.gmra.mxu1 %vm344_vm1, %v783_v58  ;;  %1567 = vmatmul.mubr.msk.f32.gmra.mxu0 %vm344_vm1, %v783_v58 }
 0x140   : > { %1173 = vmatprep.mubr.f32.mxu1 %v1710_v10  ;;  %1286 = vmatprep.mubr.f32.mxu0 %v1710_v10 }
 0x143   : > { %1560 = vmatmul.mubr.msk.f32.gmra.mxu1 %vm344_vm1, %v784_v17  ;;  %1568 = vmatmul.mubr.msk.f32.gmra.mxu0 %vm344_vm1, %v784_v17 }
 0x1bc   : > { %v907_v15 = vpop.f32.mrf.mxu1  ;;  %v1020_v52 = vpop.f32.mrf.mxu0 }
 0x1bd   : > { %v1293_v7 = vmax.f32 %v907_v15, 0.0  ;;  %v1295_v48 = vmax.f32 %v1020_v52, 0.0 }
 0x1be   : > { %v909_v14 = vpop.f32.mrf.mxu1  ;;  %v1022_v13 = vpop.f32.mrf.mxu0 }
 0x1bf   : > { %1357 = vst [vmem:[%s2356_s9] sm:$0xff] %v1293_v7  ;;  %1359 = vst [vmem:[%s2356_s9 + $0x10] sm:$0xff] %v1295_v48  ;;  %v1294_v10 = vmax.f32 %v909_v14, 0.0  ;;  %v1296_v6 = vmax.f32 %v1022_v13, 0.0 }
 0x1c0   : > { %v913_v47 = vpop.f32.mrf.mxu1  ;;  %v1026_v26 = vpop.f32.mrf.mxu0 }
 0x1c1   : > { %1358 = vst [vmem:[%s2356_s9 + $0x8] sm:$0xff] %v1294_v10  ;;  %1360 = vst [vmem:[%s2356_s9 + $0x18] sm:$0xff] %v1296_v6  ;;  %v1301_v38 = vmax.f32 %v913_v47, 0.0  ;;  %v1303_v40 = vmax.f32 %v1026_v26, 0.0 }
 0x1c2   : > { %v915_v33 = vpop.f32.mrf.mxu1  ;;  %v1028_v35 = vpop.f32.mrf.mxu0 }
 0x1c3   : > { %1365 = vst [vmem:[%s2356_s9 + $0x40] sm:$0xff] %v1301_v38  ;;  %1367 = vst [vmem:[%s2356_s9 + $0x50] sm:$0xff] %v1303_v40  ;;  %v1302_v53 = vmax.f32 %v915_v33, 0.0  ;;  %v1304_v31 = vmax.f32 %v1028_v35, 0.0 }
 0x1c4   : > { %v919_v57 = vpop.f32.mrf.mxu1  ;;  %v1032_v62 = vpop.f32.mrf.mxu0 }
 0x1c5   : > { %1366 = vst [vmem:[%s2356_s9 + $0x48] sm:$0xff] %v1302_v53  ;;  %1368 = vst [vmem:[%s2356_s9 + $0x58] sm:$0xff] %v1304_v31  ;;  %v1309_v34 = vmax.f32 %v919_v57, 0.0  ;;  %v1311_v0 = vmax.f32 %v1032_v62, 0.0 }
 0x1c6   : > { %v921_v1 = vpop.f32.mrf.mxu1  ;;  %v1034_v27 = vpop.f32.mrf.mxu0 }
 0x1c7   : > { %1373 = vst [vmem:[%s2356_s9 + $0x80] sm:$0xff] %v1309_v34  ;;  %1375 = vst [vmem:[%s2356_s9 + $0x90] sm:$0xff] %v1311_v0  ;;  %v1310_v2 = vmax.f32 %v921_v1, 0.0  ;;  %v1312_v50 = vmax.f32 %v1034_v27, 0.0 }
 0x1c9   : > { %1374 = vst [vmem:[%s2356_s9 + $0x88] sm:$0xff] %v1310_v2  ;;  %1376 = vst [vmem:[%s2356_s9 + $0x98] sm:$0xff] %v1312_v50  ;;  %v925_v44 = vpop.f32.mrf.mxu1  ;;  %v1038_v55 = vpop.f32.mrf.mxu0 }
 0x1ca   : > { %v1317_v51 = vmax.f32 %v925_v44, 0.0  ;;  %v1319_v4 = vmax.f32 %v1038_v55, 0.0 }
 0x1cb   : > { %v927_v20 = vpop.f32.mrf.mxu1  ;;  %v1040_v24 = vpop.f32.mrf.mxu0 }
 0x1cc   : > { %1381 = vst [vmem:[%s2356_s9 + $0xc0] sm:$0xff] %v1317_v51  ;;  %1383 = vst [vmem:[%s2356_s9 + $0xd0] sm:$0xff] %v1319_v4  ;;  %v1318_v25 = vmax.f32 %v927_v20, 0.0  ;;  %v1320_v41 = vmax.f32 %v1040_v24, 0.0 }
 0x1ce   : > { %1382 = vst [vmem:[%s2356_s9 + $0xc8] sm:$0xff] %v1318_v25  ;;  %1384 = vst [vmem:[%s2356_s9 + $0xd8] sm:$0xff] %v1320_v41 }
 0x1cf   : > { %v931_v63 = vpop.f32.mrf.mxu1  ;;  %v1044_v5 = vpop.f32.mrf.mxu0 }
 0x1d0   : > { %v1325_v8 = vmax.f32 %v931_v63, 0.0  ;;  %v1327_v9 = vmax.f32 %v1044_v5, 0.0 }
 0x1d1   : > { %v933_v3 = vpop.f32.mrf.mxu1  ;;  %v1046_v11 = vpop.f32.mrf.mxu0 }
 0x1d2   : > { %1389 = vst [vmem:[%s2356_s9 + $0x100] sm:$0xff] %v1325_v8  ;;  %1391 = vst [vmem:[%s2356_s9 + $0x110] sm:$0xff] %v1327_v9  ;;  %v1326_v19 = vmax.f32 %v933_v3, 0.0  ;;  %v1328_v32 = vmax.f32 %v1046_v11, 0.0 }
 0x1d4   : > { %1390 = vst [vmem:[%s2356_s9 + $0x108] sm:$0xff] %v1326_v19  ;;  %1392 = vst [vmem:[%s2356_s9 + $0x118] sm:$0xff] %v1328_v32 }
 0x1d6   : > { %v937_v49 = vpop.f32.mrf.mxu1  ;;  %v1050_v22 = vpop.f32.mrf.mxu0 }
 0x1d7   : > { %v1333_v37 = vmax.f32 %v937_v49, 0.0  ;;  %v1335_v56 = vmax.f32 %v1050_v22, 0.0 }
 0x1d8   : > { %v939_v12 = vpop.f32.mrf.mxu1  ;;  %v1052_v42 = vpop.f32.mrf.mxu0 }
 0x1d9   : > { %1397 = vst [vmem:[%s2356_s9 + $0x140] sm:$0xff] %v1333_v37  ;;  %1399 = vst [vmem:[%s2356_s9 + $0x150] sm:$0xff] %v1335_v56  ;;  %v1334_v23 = vmax.f32 %v939_v12, 0.0  ;;  %v1336_v61 = vmax.f32 %v1052_v42, 0.0 }
 0x1db   : > { %1398 = vst [vmem:[%s2356_s9 + $0x148] sm:$0xff] %v1334_v23  ;;  %1400 = vst [vmem:[%s2356_s9 + $0x158] sm:$0xff] %v1336_v61 }
 0x1dd   : > { %v943_v60 = vpop.f32.mrf.mxu1  ;;  %v1056_v28 = vpop.f32.mrf.mxu0 }
 0x1de   : > { %v1341_v30 = vmax.f32 %v943_v60, 0.0  ;;  %v1343_v21 = vmax.f32 %v1056_v28, 0.0 }
 0x1df   : > { %v945_v54 = vpop.f32.mrf.mxu1  ;;  %v1058_v45 = vpop.f32.mrf.mxu0 }
 0x1e0   : > { %1405 = vst [vmem:[%s2356_s9 + $0x180] sm:$0xff] %v1341_v30  ;;  %1407 = vst [vmem:[%s2356_s9 + $0x190] sm:$0xff] %v1343_v21  ;;  %v1342_v59 = vmax.f32 %v945_v54, 0.0  ;;  %v1344_v16 = vmax.f32 %v1058_v45, 0.0 }
 0x1e2   : > { %1406 = vst [vmem:[%s2356_s9 + $0x188] sm:$0xff] %v1342_v59  ;;  %1408 = vst [vmem:[%s2356_s9 + $0x198] sm:$0xff] %v1344_v16 }
 0x1e3   : > { %v949_v29 = vpop.f32.mrf.mxu1  ;;  %v1062_v43 = vpop.f32.mrf.mxu0 }
 0x1e4   : > { %v1349_v58 = vmax.f32 %v949_v29, 0.0  ;;  %v1351_v39 = vmax.f32 %v1062_v43, 0.0 }
 0x1e5   : > { %v951_v46 = vpop.f32.mrf.mxu1  ;;  %v1064_v18 = vpop.f32.mrf.mxu0 }
 0x1e6   : > { %1413 = vst [vmem:[%s2356_s9 + $0x1c0] sm:$0xff] %v1349_v58  ;;  %1415 = vst [vmem:[%s2356_s9 + $0x1d0] sm:$0xff] %v1351_v39  ;;  %v1350_v36 = vmax.f32 %v951_v46, 0.0  ;;  %v1352_v17 = vmax.f32 %v1064_v18, 0.0 }
 0x1e7   : > { %v1133_v15 = vpop.f32.mrf.mxu1  ;;  %v1246_v52 = vpop.f32.mrf.mxu0 }
 0x1e8   : > { %1414 = vst [vmem:[%s2356_s9 + $0x1c8] sm:$0xff] %v1350_v36  ;;  %1416 = vst [vmem:[%s2356_s9 + $0x1d8] sm:$0xff] %v1352_v17  ;;  %v1297_v7 = vmax.f32 %v1133_v15, 0.0  ;;  %v1299_v48 = vmax.f32 %v1246_v52, 0.0 }
 0x1e9   : > { %v1135_v14 = vpop.f32.mrf.mxu1  ;;  %v1248_v13 = vpop.f32.mrf.mxu0 }
 0x1ea   : > { %1361 = vst [vmem:[%s2356_s9 + $0x20] sm:$0xff] %v1297_v7  ;;  %1363 = vst [vmem:[%s2356_s9 + $0x30] sm:$0xff] %v1299_v48  ;;  %v1298_v10 = vmax.f32 %v1135_v14, 0.0  ;;  %v1300_v6 = vmax.f32 %v1248_v13, 0.0 }
 0x1eb   : > { %v1139_v47 = vpop.f32.mrf.mxu1  ;;  %v1252_v26 = vpop.f32.mrf.mxu0 }
 0x1ec   : > { %1362 = vst [vmem:[%s2356_s9 + $0x28] sm:$0xff] %v1298_v10  ;;  %1364 = vst [vmem:[%s2356_s9 + $0x38] sm:$0xff] %v1300_v6  ;;  %v1305_v38 = vmax.f32 %v1139_v47, 0.0  ;;  %v1307_v40 = vmax.f32 %v1252_v26, 0.0 }
 0x1ed   : > { %v1141_v33 = vpop.f32.mrf.mxu1  ;;  %v1254_v35 = vpop.f32.mrf.mxu0 }
 0x1ee   : > { %1369 = vst [vmem:[%s2356_s9 + $0x60] sm:$0xff] %v1305_v38  ;;  %1371 = vst [vmem:[%s2356_s9 + $0x70] sm:$0xff] %v1307_v40  ;;  %v1306_v53 = vmax.f32 %v1141_v33, 0.0  ;;  %v1308_v31 = vmax.f32 %v1254_v35, 0.0 }
 0x1ef   : > { %v1145_v57 = vpop.f32.mrf.mxu1  ;;  %v1258_v62 = vpop.f32.mrf.mxu0 }
 0x1f0   : > { %1370 = vst [vmem:[%s2356_s9 + $0x68] sm:$0xff] %v1306_v53  ;;  %1372 = vst [vmem:[%s2356_s9 + $0x78] sm:$0xff] %v1308_v31  ;;  %v1313_v34 = vmax.f32 %v1145_v57, 0.0  ;;  %v1315_v0 = vmax.f32 %v1258_v62, 0.0 }
 0x1f1   : > { %v1147_v1 = vpop.f32.mrf.mxu1  ;;  %v1260_v27 = vpop.f32.mrf.mxu0 }
 0x1f2   : > { %1377 = vst [vmem:[%s2356_s9 + $0xa0] sm:$0xff] %v1313_v34  ;;  %1379 = vst [vmem:[%s2356_s9 + $0xb0] sm:$0xff] %v1315_v0  ;;  %v1314_v2 = vmax.f32 %v1147_v1, 0.0  ;;  %v1316_v50 = vmax.f32 %v1260_v27, 0.0 }
 0x1f3   : > { %v1151_v44 = vpop.f32.mrf.mxu1  ;;  %v1264_v55 = vpop.f32.mrf.mxu0 }
 0x1f4   : > { %1378 = vst [vmem:[%s2356_s9 + $0xa8] sm:$0xff] %v1314_v2  ;;  %1380 = vst [vmem:[%s2356_s9 + $0xb8] sm:$0xff] %v1316_v50  ;;  %v1321_v51 = vmax.f32 %v1151_v44, 0.0  ;;  %v1323_v4 = vmax.f32 %v1264_v55, 0.0 }
 0x1f5   : > { %v1153_v20 = vpop.f32.mrf.mxu1  ;;  %v1266_v24 = vpop.f32.mrf.mxu0 }
 0x1f6   : > { %1385 = vst [vmem:[%s2356_s9 + $0xe0] sm:$0xff] %v1321_v51  ;;  %1387 = vst [vmem:[%s2356_s9 + $0xf0] sm:$0xff] %v1323_v4  ;;  %v1322_v25 = vmax.f32 %v1153_v20, 0.0  ;;  %v1324_v41 = vmax.f32 %v1266_v24, 0.0 }
 0x1f7   : > { %v1157_v63 = vpop.f32.mrf.mxu1  ;;  %v1270_v5 = vpop.f32.mrf.mxu0 }
 0x1f8   : > { %1386 = vst [vmem:[%s2356_s9 + $0xe8] sm:$0xff] %v1322_v25  ;;  %1388 = vst [vmem:[%s2356_s9 + $0xf8] sm:$0xff] %v1324_v41  ;;  %v1329_v8 = vmax.f32 %v1157_v63, 0.0  ;;  %v1331_v9 = vmax.f32 %v1270_v5, 0.0 }
 0x1f9   : > { %v1159_v3 = vpop.f32.mrf.mxu1  ;;  %v1272_v11 = vpop.f32.mrf.mxu0 }
 0x1fa   : > { %1393 = vst [vmem:[%s2356_s9 + $0x120] sm:$0xff] %v1329_v8  ;;  %1395 = vst [vmem:[%s2356_s9 + $0x130] sm:$0xff] %v1331_v9  ;;  %v1330_v19 = vmax.f32 %v1159_v3, 0.0  ;;  %v1332_v32 = vmax.f32 %v1272_v11, 0.0 }
 0x1fb   : > { %v1163_v49 = vpop.f32.mrf.mxu1  ;;  %v1276_v22 = vpop.f32.mrf.mxu0 }
 0x1fc   : > { %1394 = vst [vmem:[%s2356_s9 + $0x128] sm:$0xff] %v1330_v19  ;;  %1396 = vst [vmem:[%s2356_s9 + $0x138] sm:$0xff] %v1332_v32  ;;  %v1337_v37 = vmax.f32 %v1163_v49, 0.0  ;;  %v1339_v56 = vmax.f32 %v1276_v22, 0.0 }
 0x1fd   : > { %v1165_v12 = vpop.f32.mrf.mxu1  ;;  %v1278_v42 = vpop.f32.mrf.mxu0 }
 0x1fe   : > { %1401 = vst [vmem:[%s2356_s9 + $0x160] sm:$0xff] %v1337_v37  ;;  %1403 = vst [vmem:[%s2356_s9 + $0x170] sm:$0xff] %v1339_v56  ;;  %v1338_v23 = vmax.f32 %v1165_v12, 0.0  ;;  %v1340_v61 = vmax.f32 %v1278_v42, 0.0 }
 0x1ff   : > { %v1169_v60 = vpop.f32.mrf.mxu1  ;;  %v1282_v28 = vpop.f32.mrf.mxu0 }
 0x200   : > { %1402 = vst [vmem:[%s2356_s9 + $0x168] sm:$0xff] %v1338_v23  ;;  %1404 = vst [vmem:[%s2356_s9 + $0x178] sm:$0xff] %v1340_v61  ;;  %v1345_v30 = vmax.f32 %v1169_v60, 0.0  ;;  %v1347_v21 = vmax.f32 %v1282_v28, 0.0 }
 0x201   : > { %v1171_v54 = vpop.f32.mrf.mxu1  ;;  %v1284_v45 = vpop.f32.mrf.mxu0 }
 0x202   : > { %1409 = vst [vmem:[%s2356_s9 + $0x1a0] sm:$0xff] %v1345_v30  ;;  %1411 = vst [vmem:[%s2356_s9 + $0x1b0] sm:$0xff] %v1347_v21  ;;  %v1346_v59 = vmax.f32 %v1171_v54, 0.0  ;;  %v1348_v16 = vmax.f32 %v1284_v45, 0.0 }
 0x203   : > { %v1175_v29 = vpop.f32.mrf.mxu1  ;;  %v1288_v43 = vpop.f32.mrf.mxu0 }
 0x204   : > { %1410 = vst [vmem:[%s2356_s9 + $0x1a8] sm:$0xff] %v1346_v59  ;;  %1412 = vst [vmem:[%s2356_s9 + $0x1b8] sm:$0xff] %v1348_v16  ;;  %v1353_v58 = vmax.f32 %v1175_v29, 0.0  ;;  %v1355_v39 = vmax.f32 %v1288_v43, 0.0 }
 0x205   : > { %v1177_v46 = vpop.f32.mrf.mxu1  ;;  %v1290_v18 = vpop.f32.mrf.mxu0 }
 0x206   : > { %1417 = vst [vmem:[%s2356_s9 + $0x1e0] sm:$0xff] %v1353_v58  ;;  %1419 = vst [vmem:[%s2356_s9 + $0x1f0] sm:$0xff] %v1355_v39  ;;  %v1354_v36 = vmax.f32 %v1177_v46, 0.0  ;;  %v1356_v17 = vmax.f32 %v1290_v18, 0.0 }
 0x208   : > { %1418 = vst [vmem:[%s2356_s9 + $0x1e8] sm:$0xff] %v1354_v36  ;;  %1420 = vst [vmem:[%s2356_s9 + $0x1f8] sm:$0xff] %v1356_v17 }
 0x209   : > { %1661 = shalt.err (!%p1658_p3)
}
 0x20a   : > { %s1662_s28 = scalar_lea.hbm %s2423_s14, 8192  ;;  %s1666_s5 = scalar_lea.hbm %s2477_s4, 16384 }
 0x20b   : > { %p1663_p4 = scmp.ne.s32.totalorder %s2423_s14, %s1662_s28  ;;  %p1667_p9 = scmp.lt.s32.totalorder %s2423_s14, %s2477_s4 }
 0x20c   : > { %p1668_p10 = scmp.lt.s32.totalorder %s1666_s5, %s1662_s28 }
 0x20d   : > { %p1664_p7 = pnand %p1663_p4, %p1777_p5 }
 0x20e   : > { %p1669_p11 = por %p1668_p10, %p1667_p9 }
 0x20f   : > { %p1665_p8 = pneg %p1664_p7 }
 0x211   : > { %p1670_p12 = pnand %p1669_p11, %p1665_p8 }
 0x213   : > { %1673 = shalt.err (!%p1670_p12)
}
 0x214   : > { %s1712_s8 = smov 1024   ;;  %s1713_s9 = smov 64  }
 0x215   : > { %1606 = dma.vmem_to_hbm [thread:$0]  (%p1777_p5), %s2425_s11, 8192, %s2423_s14, %s2433_s19, %s1712_s8, %s1712_s8, %s1713_s9  }
 0x216 PF: > { %p1612_p13 = scmp.ge.s32.totalorder %s1708_s18, 2  ;;  %s1450_s10 = sand.u32 1, %s1696_s15  }
 0x217   : > { %s1451_s12 = scalar_lea.sflag [#allocation4], %s1450_s10 }
 0x218   : > { %p1609_p0 = pnand %p1612_p13, %p1781_p6 }
 0x21a   : > { %p1610_p1 = pneg %p1609_p0 }
 0x21c   : > { %1691 = dma.done.wait (%p1610_p1), %s1451_s12, 8192  }
 0x21d   : > { %1693 = vsyncadd (%p1610_p1), %s1451_s12, 4294959104  ;;  %p14_p2 = scmp.ge.s32.totalorder %s1764_s21, 4   ;;  %s2510_s15 = smov %s1700_s16 }
 0x21e   : > { %s2511_s16 = smov %s1704_s17  ;;  %s2512_s17 = smov %s1775_s24 }
 0x21f   : > { %s2513_s18 = smov %s1764_s21  ;;  %16 = sbr.rel (!%p14_p2) target bundleno = 3 (0x3), region = 71 }
 0x224   :  { %1456 = vsyncpa [#allocation4], 1 }
 0x225   :  { %1458 = vsyncpa [#allocation4 + $0x1], 1 }

</bundles_post_ra>
